<compile_context>
chip_gen: v7x
topology: tpu7x:2x2x1
jax: 0.10.0
libtpu: 0.0.40
codegen_flags: <defaults>
</compile_context>

<pallas_src>
import functools
import math

import jax
import jax.numpy as jnp
from jax import lax
from jax.experimental import pallas as pl
from jax.experimental.pallas import tpu as pltpu

_LN_EPS = 1e-5


# ---------------------------------------------------------------------------
# Hardware-aware knobs (trace-time, best effort)
# ---------------------------------------------------------------------------
def _tpu_generation():
    """Best-effort TPU generation from device_kind; 0 if unknown."""
    try:
        kind = jax.devices()[0].device_kind.lower()
    except Exception:
        return 0
    for g in (7, 6, 5, 4):
        if f"v{g}" in kind:
            return g
    return 0


# ---------------------------------------------------------------------------
# Pallas kernel: fused LayerNorm(patch_dim) + Linear(patch_dim -> dim),
# gamma/beta pre-folded into W / b, token-packed lane-dense rows.
# ---------------------------------------------------------------------------
def _ln_linear_packed_kernel(x_ref, e_ref, onesb_ref, gsum_ref, w_ref, b_ref,
                             o_ref, *, eps):
    # x_ref:     (rt, pack*Din)        pack tokens per row (io dtype)
    # e_ref:     (pack*Din, pack)      block indicator with 1/Din baked in
    # onesb_ref: (pack, pack*Dout)     block indicator (rstd -> output lanes)
    # gsum_ref:  (pack, pack*Dout)     kron(I, gamma @ W)
    # w_ref:     (pack*Din, pack*Dout) kron(I, gamma-scaled W)   (MXU dtype)
    # b_ref:     (1, pack*Dout)        beta@W + b, tiled per token group
    # o_ref:     (rt, pack*Dout)
    x = x_ref[...]
    xf = x.astype(jnp.float32)

    # Per-token mean and E[x^2]: two independent MXU reduces of x (1/Din is
    # baked into E) -> they pipeline with the big projection below.
    mean = jnp.dot(xf, e_ref[...], preferred_element_type=jnp.float32)        # (rt, pack)
    meansq = jnp.dot(xf * xf, e_ref[...], preferred_element_type=jnp.float32)  # (rt, pack)

    # rstd in the compact (rt, pack) domain: Din x fewer EUP rsqrt lanes and a
    # short dependency chain.  Stats stay in f32 (v5e has no bf16 VPU/EUP).
    rstd = lax.rsqrt(meansq - mean * mean + eps)                               # (rt, pack)

    # Projection of the *raw* tokens against the gamma-folded block-diagonal
    # weight.  Independent of the stat chain, so the MXU stays busy.
    z = jnp.dot(x.astype(w_ref.dtype), w_ref[...],
                preferred_element_type=jnp.float32)                            # (rt, pack*Dout)

    # Per-token affine LN terms, broadcast over output lanes via tiny matmuls
    # (no in-kernel reshape/relayout needed).
    shift = jnp.dot(mean, gsum_ref[...], preferred_element_type=jnp.float32)   # mean * (gamma@W)
    scale = jnp.dot(rstd, onesb_ref[...], preferred_element_type=jnp.float32)  # rstd broadcast

    o_ref[...] = ((z - shift) * scale + b_ref[...]).astype(o_ref.dtype)


# ---------------------------------------------------------------------------
# Tile / packing selection
# ---------------------------------------------------------------------------
def _pick_pack(n_tokens, din, dout, w_itemsize, *, lane=128, max_pack=64,
               max_w_bytes=4 << 20):
    """Tokens packed per kernel row so pack*Din / pack*Dout are lane-dense
    (multiples of `lane`; lane=256 on v6e/v7x halves MXU pushes vs 128)."""
    def need(d):
        return lane // math.gcd(lane, d)

    p_out = need(dout)
    p_in = need(din)
    p_both = p_out * p_in // math.gcd(p_out, p_in)          # lcm
    for cand in (p_both, p_out, p_in, 1):
        # x2: the block-diagonal weight is double-buffered by the pipeline.
        if (cand <= max_pack and n_tokens % cand == 0
                and cand * cand * din * dout * w_itemsize * 2 <= max_w_bytes):
            return cand
    return 1


def _pick_row_tile(n_rows, bytes_per_row, *, budget_bytes, min_steps=4):
    """Row tile (multiple of 8) sized from a VMEM budget that includes the
    kernel's f32 intermediates.  Rows are padded up to a tile multiple in the
    wrapper (never a single oversized fallback block); >= min_steps grid steps
    are preferred when the problem is big enough (pipelining + megacore)."""
    def round_up8(v):
        return max(8, -(-v // 8) * 8)

    cap = max(8, (budget_bytes // max(1, bytes_per_row)) // 8 * 8)
    tile = min(cap, round_up8(n_rows))
    steps = -(-n_rows // tile)
    if steps < min_steps and n_rows >= 8 * min_steps:
        tile = min(tile, round_up8(-(-n_rows // min_steps)))
        steps = -(-n_rows // tile)
    return tile, steps * tile                       # (row_tile, padded_rows)


# ---------------------------------------------------------------------------
# pallas_call wrapper
# ---------------------------------------------------------------------------
def ln_linear_pallas(x_packed, e_mat, ones_bd, gsum_bd, w_bd, b_p, *,
                     pack, row_tile, out_dtype):
    r_pad, din_p = x_packed.shape
    dout_p = w_bd.shape[1]
    grid = (r_pad // row_tile,)

    kernel = functools.partial(_ln_linear_packed_kernel, eps=_LN_EPS)

    cost = pl.CostEstimate(
        flops=int(2 * r_pad * din_p * dout_p            # projection
                  + 4 * r_pad * din_p * pack            # mean / E[x^2] reduces
                  + 4 * r_pad * pack * dout_p           # scale / shift broadcasts
                  + 5 * r_pad * dout_p),                # elementwise epilogue
        transcendentals=int(r_pad * pack),              # compact rsqrt
        bytes_accessed=int(x_packed.size * x_packed.dtype.itemsize
                           + r_pad * dout_p * jnp.dtype(out_dtype).itemsize
                           + w_bd.size * w_bd.dtype.itemsize
                           + (e_mat.size + ones_bd.size + gsum_bd.size
                              + b_p.size) * 4),
    )

    gen = _tpu_generation()
    vmem_limit = (48 << 20) if gen >= 7 else (64 << 20)

    return pl.pallas_call(
        kernel,
        out_shape=jax.ShapeDtypeStruct((r_pad, dout_p), out_dtype),
        grid=grid,
        in_specs=[
            pl.BlockSpec((row_tile, din_p), lambda i: (i, 0)),
            pl.BlockSpec((din_p, pack), lambda i: (0, 0)),
            pl.BlockSpec((pack, dout_p), lambda i: (0, 0)),
            pl.BlockSpec((pack, dout_p), lambda i: (0, 0)),
            pl.BlockSpec((din_p, dout_p), lambda i: (0, 0)),
            pl.BlockSpec((1, dout_p), lambda i: (0, 0)),
        ],
        out_specs=pl.BlockSpec((row_tile, dout_p), lambda i: (i, 0)),
        compiler_params=pltpu.CompilerParams(
            dimension_semantics=("parallel",),
            vmem_limit_bytes=vmem_limit,
            # Let XLA fuse the pad/shift/rearrange producer of the token
            # operand into the pallas input pipeline (avoids an HBM round trip
            # of the token tensor when the fusion is legal).
            allow_input_fusion=[True, False, False, False, False, False],
        ),
        cost_estimate=cost,
    )(x_packed, e_mat, ones_bd, gsum_bd, w_bd, b_p)


# ---------------------------------------------------------------------------
# Glue: PatchShifting (is_pe=False) + einops rearrange, in plain JAX
# ---------------------------------------------------------------------------
def patch_shifting(x, merging_size):
    """Diagonal shift of the 4 channel quarters, zero fill. x: (B, C, H, W)."""
    s = merging_size // 2
    B, C, H, W = x.shape
    xp = jnp.pad(x, ((0, 0), (0, 0), (s, s), (s, s)))
    q = C // 4
    g0 = xp[:, 0 * q:1 * q, :H, :W]
    g1 = xp[:, 1 * q:2 * q, :H, 2 * s:2 * s + W]
    g2 = xp[:, 2 * q:3 * q, 2 * s:2 * s + H, :W]
    g3 = xp[:, 3 * q:, 2 * s:2 * s + H, 2 * s:2 * s + W]
    return jnp.concatenate([g0, g1, g2, g3], axis=1)


def rearrange_patches(x, p):
    """einops: 'b c (h p1) (w p2) -> b (h w) (p1 p2 c)' with p1 = p2 = p."""
    B, C, H, W = x.shape
    Hp, Wp = H // p, W // p
    x = x.reshape(B, C, Hp, p, Wp, p)
    x = jnp.transpose(x, (0, 2, 4, 3, 5, 1))              # (B, h, w, p1, p2, c)
    return x.reshape(B, Hp * Wp, p * p * C)


def shifted_patch_merging(x, params, merging_size, *, compute_dtype=jnp.bfloat16):
    B = x.shape[0]
    shifted = patch_shifting(x, merging_size)               # (B, C, H, W)
    tokens = rearrange_patches(shifted, merging_size)       # (B, N, Din)
    _, N, din = tokens.shape
    dout = params["w_t"].shape[1]
    T = B * N

    gen = _tpu_generation()
    lane = 256 if gen >= 6 else 128                          # v6e/v7x: 2x256^2 MXU
    w_itemsize = jnp.dtype(compute_dtype).itemsize
    pack = _pick_pack(T, din, dout, w_itemsize, lane=lane,
                      max_w_bytes=(2 << 20) if gen >= 7 else (4 << 20))

    # Fold the LayerNorm affine into the projection (pure f32 algebra):
    #   LN(x)@W + b = rstd*(x @ (gamma*W)) - rstd*mean*(gamma@W) + (beta@W + b)
    gamma = params["ln_gamma"].astype(jnp.float32)           # (1, Din)
    beta = params["ln_beta"].astype(jnp.float32)             # (1, Din)
    w = params["w_t"].astype(jnp.float32)                    # (Din, Dout)
    b = params["b"].astype(jnp.float32)                      # (1, Dout)
    wg = w * gamma.reshape(-1, 1)                            # gamma folded into W
    gsum = gamma @ w                                         # (1, Dout)
    b_fold = b + beta @ w                                    # beta folded into b

    eye = jnp.eye(pack, dtype=jnp.float32)
    w_bd = jnp.kron(eye, wg).astype(compute_dtype)           # (pack*Din, pack*Dout)
    e_mat = jnp.kron(eye, jnp.full((din, 1), 1.0 / din, jnp.float32))
    ones_bd = jnp.kron(eye, jnp.ones((1, dout), jnp.float32))
    gsum_bd = jnp.kron(eye, gsum)
    b_p = jnp.tile(b_fold, (1, pack))

    # Pack consecutive tokens per kernel row (free reshape) -> lane-dense I/O.
    din_p, dout_p = pack * din, pack * dout
    x_packed = tokens.reshape(T // pack, din_p).astype(compute_dtype)
    R = T // pack

    # Row tile from a VMEM budget that counts f32 intermediates, then pad the
    # rows to a tile multiple (padded zero rows are finite and sliced off).
    io_bytes = jnp.dtype(compute_dtype).itemsize
    bytes_per_row = (2 * (din_p + dout_p) * io_bytes         # double-buffered I/O
                     + 2 * din_p * 4 + 4 * dout_p * 4)       # f32 intermediates
    budget = (12 << 20) if gen >= 7 else (24 << 20)          # v7x: 64 MiB/TC VMEM
    row_tile, r_pad = _pick_row_tile(R, bytes_per_row, budget_bytes=budget)
    if r_pad != R:
        x_packed = jnp.pad(x_packed, ((0, r_pad - R), (0, 0)))

    out = ln_linear_pallas(x_packed, e_mat, ones_bd, gsum_bd, w_bd, b_p,
                           pack=pack, row_tile=row_tile, out_dtype=compute_dtype)
    if r_pad != R:
        out = out[:R]
    return out.reshape(B, N, dout)                           # free reshape


# ---------------------------------------------------------------------------
# Pure-JAX reference (for correctness check)
# ---------------------------------------------------------------------------
def reference(x, params, merging_size):
    shifted = patch_shifting(x, merging_size)
    tokens = rearrange_patches(shifted, merging_size)
    mean = jnp.mean(tokens, axis=-1, keepdims=True)
    var = jnp.mean((tokens - mean) ** 2, axis=-1, keepdims=True)
    y = (tokens - mean) * lax.rsqrt(var + _LN_EPS)
    y = y * params["ln_gamma"][0] + params["ln_beta"][0]
    return jnp.einsum("bnd,de->bne", y, params["w_t"]) + params["b"][0]


# ---------------------------------------------------------------------------
def make_params(key, in_dim, dim, merging_size):
    patch_dim = in_dim * merging_size ** 2
    k_w, k_b = jax.random.split(key)
    bound = 1.0 / math.sqrt(patch_dim)
    # nn.Linear(patch_dim, dim): weight (dim, patch_dim); store transposed.
    w = jax.random.uniform(k_w, (dim, patch_dim), jnp.float32, -bound, bound)
    b = jax.random.uniform(k_b, (1, dim), jnp.float32, -bound, bound)
    return {
        "ln_gamma": jnp.ones((1, patch_dim), jnp.float32),
        "ln_beta": jnp.zeros((1, patch_dim), jnp.float32),
        "w_t": w.T,
        "b": b,
    }


if __name__ == "__main__":
    B, C, H, W = 2, 4, 16, 16       # input: (batch, in_dim, H, W), NCHW
    merging_size = 2
    dim = 32

    key = jax.random.PRNGKey(0)
    k_x, k_p = jax.random.split(key)
    x = jax.random.normal(k_x, (B, C, H, W), jnp.float32)
    params = make_params(k_p, C, dim, merging_size)

    ref = reference(x, params, merging_size)
    N_tokens = (H // merging_size) * (W // merging_size)

    # f32 everywhere: must match the reference tightly.
    fn_f32 = jax.jit(functools.partial(shifted_patch_merging,
                                       merging_size=merging_size,
                                       compute_dtype=jnp.float32))
    out_f32 = jax.block_until_ready(fn_f32(x, params))
    assert out_f32.shape == (B, N_tokens, dim), out_f32.shape
    assert jnp.allclose(out_f32, ref, atol=5e-4, rtol=5e-4), \
        float(jnp.max(jnp.abs(out_f32 - ref)))

    # bf16 I/O + bf16 MXU operands (default perf config): looser tolerance.
    fn_bf16 = jax.jit(functools.partial(shifted_patch_merging,
                                        merging_size=merging_size,
                                        compute_dtype=jnp.bfloat16))
    out_bf16 = jax.block_until_ready(fn_bf16(x, params))
    assert out_bf16.shape == out_f32.shape
    assert jnp.allclose(out_bf16.astype(jnp.float32), ref, atol=1e-1, rtol=5e-2), \
        float(jnp.max(jnp.abs(out_bf16.astype(jnp.float32) - ref)))

    print("KERNEL_OK")
</pallas_src>

<mosaic_0001>
module attributes {stable_mosaic.version = 11 : i64} {
  func.func @_ln_linear_packed_kernel(%arg0: i32, %arg1: memref<16x128xf32, #tpu.memory_space<vmem>>, %arg2: memref<128x8xf32, #tpu.memory_space<vmem>>, %arg3: memref<8x256xf32, #tpu.memory_space<vmem>>, %arg4: memref<8x256xf32, #tpu.memory_space<vmem>>, %arg5: memref<128x256xf32, #tpu.memory_space<vmem>>, %arg6: memref<1x256xf32, #tpu.memory_space<vmem>>, %arg7: memref<16x256xf32, #tpu.memory_space<vmem>>) attributes {dimension_semantics = [#tpu.dimension_semantics<parallel>], iteration_bounds = array<i64: 1>, scalar_prefetch = 0 : i64, scratch_operands = 0 : i64, tpu.core_type = #tpu.core_type<tc>, window_params = [{transform_indices = @transform_0, window_bounds = array<i64: 16, 128>}, {pipeline_mode = #tpu.pipeline_mode<synchronous>, transform_indices = @transform_1, window_bounds = array<i64: 128, 8>}, {pipeline_mode = #tpu.pipeline_mode<synchronous>, transform_indices = @transform_2, window_bounds = array<i64: 8, 256>}, {pipeline_mode = #tpu.pipeline_mode<synchronous>, transform_indices = @transform_3, window_bounds = array<i64: 8, 256>}, {pipeline_mode = #tpu.pipeline_mode<synchronous>, transform_indices = @transform_4, window_bounds = array<i64: 128, 256>}, {pipeline_mode = #tpu.pipeline_mode<synchronous>, transform_indices = @transform_5, window_bounds = array<i64: 1, 256>}, {transform_indices = @transform_6, window_bounds = array<i64: 16, 256>}]} {
    %c0 = arith.constant 0 : index
    %c0_0 = arith.constant 0 : index
    %0 = vector.load %arg1[%c0, %c0_0] : memref<16x128xf32, #tpu.memory_space<vmem>>, vector<16x128xf32>
    %c0_1 = arith.constant 0 : index
    %c0_2 = arith.constant 0 : index
    %1 = vector.load %arg2[%c0_1, %c0_2] : memref<128x8xf32, #tpu.memory_space<vmem>>, vector<128x8xf32>
    %cst = arith.constant dense<0.000000e+00> : vector<16x8xf32>
    %2 = tpu.matmul %0, %1, %cst {dimension_numbers = #tpu.dot_dimension_numbers<[1], [0], [0], [1], [0, 0, 1, 1], [], []>} : vector<16x128xf32>, vector<128x8xf32>, vector<16x8xf32> -> vector<16x8xf32>
    %3 = arith.mulf %0, %0 : vector<16x128xf32>
    %c0_3 = arith.constant 0 : index
    %c0_4 = arith.constant 0 : index
    %4 = vector.load %arg2[%c0_3, %c0_4] : memref<128x8xf32, #tpu.memory_space<vmem>>, vector<128x8xf32>
    %cst_5 = arith.constant dense<0.000000e+00> : vector<16x8xf32>
    %5 = tpu.matmul %3, %4, %cst_5 {dimension_numbers = #tpu.dot_dimension_numbers<[1], [0], [0], [1], [0, 0, 1, 1], [], []>} : vector<16x128xf32>, vector<128x8xf32>, vector<16x8xf32> -> vector<16x8xf32>
    %6 = arith.mulf %2, %2 : vector<16x8xf32>
    %7 = arith.subf %5, %6 : vector<16x8xf32>
    %cst_6 = arith.constant 9.99999974E-6 : f32
    %8 = vector.broadcast %cst_6 : f32 to vector<16x8xf32>
    %9 = arith.addf %7, %8 : vector<16x8xf32>
    %10 = math.rsqrt %9 : vector<16x8xf32>
    %c0_7 = arith.constant 0 : index
    %c0_8 = arith.constant 0 : index
    %11 = vector.load %arg5[%c0_7, %c0_8] : memref<128x256xf32, #tpu.memory_space<vmem>>, vector<128x256xf32>
    %cst_9 = arith.constant dense<0.000000e+00> : vector<16x256xf32>
    %12 = tpu.matmul %0, %11, %cst_9 {dimension_numbers = #tpu.dot_dimension_numbers<[1], [0], [0], [1], [0, 0, 1, 1], [], []>} : vector<16x128xf32>, vector<128x256xf32>, vector<16x256xf32> -> vector<16x256xf32>
    %c0_10 = arith.constant 0 : index
    %c0_11 = arith.constant 0 : index
    %13 = vector.load %arg4[%c0_10, %c0_11] : memref<8x256xf32, #tpu.memory_space<vmem>>, vector<8x256xf32>
    %cst_12 = arith.constant dense<0.000000e+00> : vector<16x256xf32>
    %14 = tpu.matmul %2, %13, %cst_12 {dimension_numbers = #tpu.dot_dimension_numbers<[1], [0], [0], [1], [0, 0, 1, 1], [], []>} : vector<16x8xf32>, vector<8x256xf32>, vector<16x256xf32> -> vector<16x256xf32>
    %c0_13 = arith.constant 0 : index
    %c0_14 = arith.constant 0 : index
    %15 = vector.load %arg3[%c0_13, %c0_14] : memref<8x256xf32, #tpu.memory_space<vmem>>, vector<8x256xf32>
    %cst_15 = arith.constant dense<0.000000e+00> : vector<16x256xf32>
    %16 = tpu.matmul %10, %15, %cst_15 {dimension_numbers = #tpu.dot_dimension_numbers<[1], [0], [0], [1], [0, 0, 1, 1], [], []>} : vector<16x8xf32>, vector<8x256xf32>, vector<16x256xf32> -> vector<16x256xf32>
    %17 = arith.subf %12, %14 : vector<16x256xf32>
    %18 = arith.mulf %17, %16 : vector<16x256xf32>
    %c0_16 = arith.constant 0 : index
    %c0_17 = arith.constant 0 : index
    %19 = vector.load %arg6[%c0_16, %c0_17] : memref<1x256xf32, #tpu.memory_space<vmem>>, vector<1x256xf32>
    %20 = vector.broadcast %19 : vector<1x256xf32> to vector<16x256xf32>
    %21 = arith.addf %18, %20 : vector<16x256xf32>
    %c0_18 = arith.constant 0 : index
    %c0_19 = arith.constant 0 : index
    %22 = vector.load %arg7[%c0_18, %c0_19] : memref<16x256xf32, #tpu.memory_space<vmem>>, vector<16x256xf32>
    tpu.vector_store %arg7[%c0_18, %c0_19], %21 {strides = array<i32>} : memref<16x256xf32, #tpu.memory_space<vmem>>, vector<16x256xf32>,
    return
  }
  func.func @transform_0(%arg0: i32) -> (i32, i32) {
    %c0_i32 = arith.constant 0 : i32
    %c0_i32_0 = arith.constant 0 : i32
    return %arg0, %c0_i32 : i32, i32
  }
  func.func @transform_1(%arg0: i32) -> (i32, i32) {
    %c0_i32 = arith.constant 0 : i32
    %c0_i32_0 = arith.constant 0 : i32
    %c0_i32_1 = arith.constant 0 : i32
    return %c0_i32, %c0_i32_0 : i32, i32
  }
  func.func @transform_2(%arg0: i32) -> (i32, i32) {
    %c0_i32 = arith.constant 0 : i32
    %c0_i32_0 = arith.constant 0 : i32
    %c0_i32_1 = arith.constant 0 : i32
    return %c0_i32, %c0_i32_0 : i32, i32
  }
  func.func @transform_3(%arg0: i32) -> (i32, i32) {
    %c0_i32 = arith.constant 0 : i32
    %c0_i32_0 = arith.constant 0 : i32
    %c0_i32_1 = arith.constant 0 : i32
    return %c0_i32, %c0_i32_0 : i32, i32
  }
  func.func @transform_4(%arg0: i32) -> (i32, i32) {
    %c0_i32 = arith.constant 0 : i32
    %c0_i32_0 = arith.constant 0 : i32
    %c0_i32_1 = arith.constant 0 : i32
    return %c0_i32, %c0_i32_0 : i32, i32
  }
  func.func @transform_5(%arg0: i32) -> (i32, i32) {
    %c0_i32 = arith.constant 0 : i32
    %c0_i32_0 = arith.constant 0 : i32
    %c0_i32_1 = arith.constant 0 : i32
    return %c0_i32, %c0_i32_0 : i32, i32
  }
  func.func @transform_6(%arg0: i32) -> (i32, i32) {
    %c0_i32 = arith.constant 0 : i32
    %c0_i32_0 = arith.constant 0 : i32
    return %arg0, %c0_i32 : i32, i32
  }
}

</mosaic_0001>

<bundles_post_ra>
// kernel: shifted_patch_merging.1
= control target key start
LH: loop header
LB: loop body
LE: loop exit
PB: predicated region body
PF: predicated region fallthrough
CT: control target
= control target key end

     0   :  { %11 = vsyncpa [#allocation3], 0  ;;  %s1151_s0 = inlined_call_operand.hbm [shape: f32[16,128], index: 0, kind: input, shape index: {}]   ;;  %s1152_s1 = inlined_call_operand.hbm [shape: f32[128,8], index: 1, kind: input, shape index: {}]   ;;  %s1153_s2 = inlined_call_operand.hbm [shape: f32[8,256], index: 2, kind: input, shape index: {}]   ;;  %s1154_s3 = inlined_call_operand.hbm [shape: f32[8,256], index: 3, kind: input, shape index: {}]   ;;  %s1155_s4 = inlined_call_operand.hbm [shape: f32[128,256], index: 4, kind: input, shape index: {}]   ;;  %s1156_s5 = inlined_call_operand.hbm [shape: f32[1,256], index: 5, kind: input, shape index: {}]   ;;  %s1157_s6 = inlined_call_operand.hbm [shape: f32[16,256], index: 6, kind: output, shape index: {}]  }
   0x1   :  { %12 = vsyncpa [#allocation6], 0 }
   0x2   :  { %13 = vsyncpa [#allocation9], 0 }
   0x3   :  { %14 = vsyncpa [#allocation12], 0 }
   0x4   :  { %15 = vsyncpa [#allocation4], 0  ;;  %s992_s21 = smov [#allocation5]   ;;  %s993_s23 = smov [#allocation8]  }
   0x5   :  { %s33_s22 = sshll.u32 %s992_s21, 4  ;;  %s56_s24 = sshll.u32 %s993_s23, 4  ;;  %s34_s22 = int_to_ptr.vmem [resolvable:$true] %s33_s22  ;;  %s57_s24 = int_to_ptr.vmem [resolvable:$true] %s56_s24 }
   0x6   :  { %s828_s27 = scalar_lea.hbm %s1152_s1, 2048 }
   0x7   :  { %p829_p0 = scmp.ne.s32.totalorder %s1152_s1, %s828_s27  ;;  %p832_p1 = scmp.lt.u32.totalorder %s828_s27, %s1152_s1 }
   0x9   :  { %p834_p2 = pnand %p832_p1, %p829_p0 }
   0xb   :  { %837 = shalt.err (!%p834_p2)
}
   0xc   :  { %s838_s8 = scalar_lea.vmem %s34_s22, 2048  ;;  %p843_p4 = scmp.lt.s32.totalorder %s34_s22, %s34_s22 }
   0xd   :  { %p839_p3 = scmp.ne.s32.totalorder %s34_s22, %s838_s8  ;;  %p844_p5 = scmp.lt.s32.totalorder %s838_s8, %s838_s8 }
   0xf   :  { %p845_p6 = por %p844_p5, %p843_p4 }
  0x11   :  { %p846_p7 = pnand %p845_p6, %p839_p3 }
  0x13   :  { %849 = shalt.err (!%p846_p7)
}
  0x14   :  { %s994_s9 = smov 128   ;;  %s995_s10 = smov 8  }
  0x15   :  { %39 = dma.hbm_to_vmem [thread:$0]  %s1152_s1, 2048, %s34_s22, [#allocation6], %s994_s9, %s994_s9, %s995_s10  }
  0x16   :  { %s850_s15 = scalar_lea.hbm %s1154_s3, 256 }
  0x17   :  { %p851_p8 = scmp.ne.s32.totalorder %s1154_s3, %s850_s15  ;;  %p854_p9 = scmp.lt.u32.totalorder %s850_s15, %s1154_s3 }
  0x19   :  { %p856_p10 = pnand %p854_p9, %p851_p8 }
  0x1b   :  { %859 = shalt.err (!%p856_p10)
}
  0x1c   :  { %s860_s20 = scalar_lea.vmem %s57_s24, 256  ;;  %p865_p12 = scmp.lt.s32.totalorder %s57_s24, %s57_s24 }
  0x1d   :  { %p861_p11 = scmp.ne.s32.totalorder %s57_s24, %s860_s20  ;;  %p866_p13 = scmp.lt.s32.totalorder %s860_s20, %s860_s20 }
  0x1f   :  { %p867_p0 = por %p866_p13, %p865_p12 }
  0x21   :  { %p868_p1 = pnand %p867_p0, %p861_p11 }
  0x23   :  { %871 = shalt.err (!%p868_p1)
}
  0x24   :  { %59 = dma.hbm_to_vmem [thread:$0]  %s1154_s3, 256, %s57_s24, [#allocation9]  }
  0x25   :  { %s996_s22 = smov [#allocation2]   ;;  %s997_s25 = smov [#allocation7]  }
  0x26   :  { %s21_s23 = sshll.u32 %s996_s22, 4  ;;  %s46_s26 = sshll.u32 %s997_s25, 4  ;;  %s22_s23 = int_to_ptr.vmem [resolvable:$true] %s21_s23  ;;  %s47_s26 = int_to_ptr.vmem [resolvable:$true] %s46_s26 }
  0x27   :  { %s872_s29 = scalar_lea.hbm %s1151_s0, 256 }
  0x28   :  { %p873_p2 = scmp.ne.s32.totalorder %s1151_s0, %s872_s29  ;;  %p876_p3 = scmp.lt.u32.totalorder %s872_s29, %s1151_s0 }
  0x2a   :  { %p878_p4 = pnand %p876_p3, %p873_p2 }
  0x2c   :  { %881 = shalt.err (!%p878_p4)
}
  0x2d   :  { %s882_s3 = scalar_lea.vmem %s22_s23, 256  ;;  %p887_p6 = scmp.lt.s32.totalorder %s22_s23, %s22_s23 }
  0x2e   :  { %p883_p5 = scmp.ne.s32.totalorder %s22_s23, %s882_s3  ;;  %p888_p7 = scmp.lt.s32.totalorder %s882_s3, %s882_s3 }
  0x30   :  { %p889_p8 = por %p888_p7, %p887_p6 }
  0x32   :  { %p890_p9 = pnand %p889_p8, %p883_p5 }
  0x34   :  { %893 = shalt.err (!%p890_p9)
}
  0x35   :  { %27 = dma.hbm_to_vmem [thread:$0]  %s1151_s0, 256, %s22_s23, [#allocation3], %s994_s9, %s994_s9, %s995_s10  }
  0x36   :  { %s894_s15 = scalar_lea.hbm %s1153_s2, 256 }
  0x37   :  { %p895_p10 = scmp.ne.s32.totalorder %s1153_s2, %s894_s15  ;;  %p898_p11 = scmp.lt.u32.totalorder %s894_s15, %s1153_s2 }
  0x39   :  { %p900_p12 = pnand %p898_p11, %p895_p10 }
  0x3b   :  { %903 = shalt.err (!%p900_p12)
}
  0x3c   :  { %s904_s20 = scalar_lea.vmem %s47_s26, 256  ;;  %p909_p0 = scmp.lt.s32.totalorder %s47_s26, %s47_s26 }
  0x3d   :  { %p905_p13 = scmp.ne.s32.totalorder %s47_s26, %s904_s20  ;;  %p910_p1 = scmp.lt.s32.totalorder %s904_s20, %s904_s20 }
  0x3f   :  { %p911_p2 = por %p910_p1, %p909_p0 }
  0x41   :  { %p912_p3 = pnand %p911_p2, %p905_p13 }
  0x43   :  { %915 = shalt.err (!%p912_p3)
}
  0x44   :  { %49 = dma.hbm_to_vmem [thread:$0]  %s1153_s2, 256, %s47_s26, [#allocation6]  }
  0x45   :  { %s998_s10 = smov [#allocation10]   ;;  %s916_s23 = scalar_lea.hbm %s1155_s4, 4096 }
  0x46   :  { %s65_s1 = sshll.u32 %s998_s10, 4  ;;  %p917_p4 = scmp.ne.s32.totalorder %s1155_s4, %s916_s23  ;;  %s66_s1 = int_to_ptr.vmem [resolvable:$true] %s65_s1 }
  0x47   :  { %p920_p5 = scmp.lt.u32.totalorder %s916_s23, %s1155_s4 }
  0x49   :  { %p922_p6 = pnand %p920_p5, %p917_p4 }
  0x4b   :  { %925 = shalt.err (!%p922_p6)
}
  0x4c   :  { %s926_s30 = scalar_lea.vmem %s66_s1, 4096  ;;  %p931_p8 = scmp.lt.s32.totalorder %s66_s1, %s66_s1 }
  0x4d   :  { %p927_p7 = scmp.ne.s32.totalorder %s66_s1, %s926_s30  ;;  %p932_p9 = scmp.lt.s32.totalorder %s926_s30, %s926_s30 }
  0x4f   :  { %p933_p10 = por %p932_p9, %p931_p8 }
  0x51   :  { %p934_p11 = pnand %p933_p10, %p927_p7 }
  0x53   :  { %937 = shalt.err (!%p934_p11)
}
  0x54   :  { %s999_s2 = smov 256   ;;  %s1000_s26 = smov 16  }
  0x55   :  { %71 = dma.hbm_to_vmem [thread:$0]  %s1155_s4, 4096, %s66_s1, [#allocation9], %s999_s2, %s999_s2, %s1000_s26  }
  0x56   :  { %s1001_s11 = smov [#allocation11]   ;;  %s938_s13 = scalar_lea.hbm %s1156_s5, 32 }
  0x57   :  { %s78_s3 = sshll.u32 %s1001_s11, 4  ;;  %p939_p12 = scmp.ne.s32.totalorder %s1156_s5, %s938_s13  ;;  %s79_s3 = int_to_ptr.vmem [resolvable:$true] %s78_s3 }
  0x58   :  { %p942_p13 = scmp.lt.u32.totalorder %s938_s13, %s1156_s5 }
  0x5a   :  { %p944_p0 = pnand %p942_p13, %p939_p12 }
  0x5c   :  { %947 = shalt.err (!%p944_p0)
}
  0x5d   :  { %s948_s18 = scalar_lea.vmem %s79_s3, 32  ;;  %p953_p2 = scmp.lt.s32.totalorder %s79_s3, %s79_s3 }
  0x5e   :  { %p949_p1 = scmp.ne.s32.totalorder %s79_s3, %s948_s18  ;;  %p954_p3 = scmp.lt.s32.totalorder %s948_s18, %s948_s18 }
  0x60   :  { %p955_p4 = por %p954_p3, %p953_p2 }
  0x62   :  { %p956_p5 = pnand %p955_p4, %p949_p1 }
  0x64   :  { %959 = shalt.err (!%p956_p5)
}
  0x65   :  { %81 = dma.hbm_to_vmem [thread:$0]  %s1156_s5, 32, %s79_s3, [#allocation12]  }
  0x66   :  { %982 = dma.done.wait [#allocation3], 256  }
  0x67   :  { %983 = vsyncadd [#allocation3], 4294967040 }
  0x68   :  { %984 = dma.done.wait [#allocation6], 2304  }
  0x69   :  { %985 = vsyncadd [#allocation6], 4294964992 }
  0x6a   :  { %986 = dma.done.wait [#allocation9], 4352  }
  0x6b   :  { %987 = vsyncadd [#allocation9], 4294962944 }
  0x6c   :  { %988 = dma.done.wait [#allocation12], 32  }
  0x6d   :  { %989 = vsyncadd [#allocation12], 4294967264  ;;  %v102_v0 = vld [vmem:[#allocation5] sm:$0xff]  ;;  %v103_v1 = vld [vmem:[#allocation5 + $0x8] sm:$0xff]  ;;  %vm389_vm0 = vcmask 64512   ;;  %s1003_s5 = smov [#allocation13]  }
  0x6e   :  { %v104_v2 = vld [vmem:[#allocation5 + $0x10] sm:$0xff]  ;;  %v716_v3 = vpack.c.bf16 %v103_v1, %v102_v0  ;;  %v105_v4 = vld [vmem:[#allocation5 + $0x18] sm:$0xff]  ;;  %v106_v6 = vld [vmem:[#allocation5 + $0x20] sm:$0xff]  ;;  %s591_s20 = sshll.u32 %s1003_s5, 4  ;;  %s592_s20 = int_to_ptr.vmem [resolvable:$true] %s591_s20 }
  0x6f   :  { %v720_v5 = vpack.c.bf16 %v105_v4, %v104_v2  ;;  %v107_v7 = vld [vmem:[#allocation5 + $0x28] sm:$0xff]  ;;  %v1120_v9 = vld [vmem:[#allocation2] sm:$0xff]  ;;  %v109_v11 = vld [vmem:[#allocation5 + $0x38] sm:$0xff]  ;;  %s960_s0 = scalar_lea.vmem %s592_s20, 512  ;;  %p965_p7 = scmp.lt.s32.totalorder %s592_s20, %s592_s20 }
  0x70   :  { %717 = vmatprep.subr.bf16.mxu0 %v716_v3  ;;  %749 = vmatprep.subr.bf16.mxu1 %v716_v3  ;;  %v724_v8 = vpack.c.bf16 %v107_v7, %v106_v6  ;;  %v108_v10 = vld [vmem:[#allocation5 + $0x30] sm:$0xff]  ;;  %v193_v12 = vmul.f32 %v1120_v9, %v1120_v9  ;;  %v110_v14 = vld [vmem:[#allocation5 + $0x40] sm:$0xff]  ;;  %v111_v15 = vld [vmem:[#allocation5 + $0x48] sm:$0xff]  ;;  %p961_p6 = scmp.ne.s32.totalorder %s592_s20, %s960_s0  ;;  %p966_p8 = scmp.lt.s32.totalorder %s960_s0, %s960_s0 }
  0x71   :  { %719 = vmatpush3.bf16.msra.mxu0 %v716_v3  ;;  %751 = vmatpush3.bf16.msra.mxu1 %v716_v3  ;;  %v728_v13 = vpack.c.bf16 %v109_v11, %v108_v10  ;;  %v732_v16 = vpack.c.bf16 %v111_v15, %v110_v14  ;;  %v112_v17 = vld [vmem:[#allocation5 + $0x50] sm:$0xff]  ;;  %v113_v18 = vld [vmem:[#allocation5 + $0x58] sm:$0xff]  ;;  %v114_v20 = vld [vmem:[#allocation5 + $0x60] sm:$0xff]  ;;  %v1002_v15 = vmov 0.0  }
  0x72   :  { %721 = vmatprep.subr.bf16.mxu0 %v720_v5  ;;  %753 = vmatprep.subr.bf16.mxu1 %v720_v5  ;;  %v736_v19 = vpack.c.bf16 %v113_v18, %v112_v17  ;;  %v115_v21 = vld [vmem:[#allocation5 + $0x68] sm:$0xff]  ;;  %v116_v23 = vld [vmem:[#allocation5 + $0x70] sm:$0xff]  ;;  %v117_v24 = vld [vmem:[#allocation5 + $0x78] sm:$0xff]  ;;  %p967_p9 = por %p966_p8, %p965_p7 }
  0x73   :  { %678 = vmatprep.mubr.f32.mxu0 %v1120_v9  ;;  %713 = vmatprep.mubr.f32.mxu1 %v193_v12  ;;  %v740_v22 = vpack.c.bf16 %v115_v21, %v114_v20  ;;  %v744_v25 = vpack.c.bf16 %v117_v24, %v116_v23  ;;  %v279_v26 = vld [vmem:[#allocation10 + $0x8] sm:$0xff]  ;;  %v281_v27 = vld [vmem:[#allocation10 + $0x18] sm:$0xff]  ;;  %v278_v30 = vld [vmem:[#allocation10] sm:$0xff] }
  0x74   :  { %v1125_v28 = vld [vmem:[#allocation2 + $0x8] sm:$0xff]  ;;  %v780_v29 = vpack.c.bf16 %v281_v27, %v279_v26  ;;  %v280_v31 = vld [vmem:[#allocation10 + $0x10] sm:$0xff]  ;;  %v283_v32 = vld [vmem:[#allocation10 + $0x28] sm:$0xff]  ;;  %p968_p10 = pnand %p967_p9, %p961_p6 }
  0x75   :  { %723 = vmatpush3.bf16.msra.mxu0 %v720_v5  ;;  %755 = vmatpush3.bf16.msra.mxu1 %v720_v5  ;;  %v285_v33 = vld [vmem:[#allocation10 + $0x38] sm:$0xff]  ;;  %v194_v34 = vmul.f32 %v1125_v28, %v1125_v28  ;;  %v782_v35 = vpack.c.bf16 %v280_v31, %v278_v30  ;;  %v282_v37 = vld [vmem:[#allocation10 + $0x20] sm:$0xff]  ;;  %v284_v38 = vld [vmem:[#allocation10 + $0x30] sm:$0xff] }
  0x76   :  { %725 = vmatprep.subr.bf16.mxu0 %v724_v8  ;;  %757 = vmatprep.subr.bf16.mxu1 %v724_v8  ;;  %v784_v36 = vpack.c.bf16 %v285_v33, %v283_v32  ;;  %v287_v39 = vld [vmem:[#allocation10 + $0x48] sm:$0xff]  ;;  %v289_v40 = vld [vmem:[#allocation10 + $0x58] sm:$0xff]  ;;  %v786_v41 = vpack.c.bf16 %v284_v38, %v282_v37  ;;  %v286_v43 = vld [vmem:[#allocation10 + $0x40] sm:$0xff]  ;;  %v568_v38 = vlaneseq }
  0x77   :  { %v788_v42 = vpack.c.bf16 %v289_v40, %v287_v39  ;;  %v288_v44 = vld [vmem:[#allocation10 + $0x50] sm:$0xff]  ;;  %v291_v45 = vld [vmem:[#allocation10 + $0x68] sm:$0xff]  ;;  %v293_v46 = vld [vmem:[#allocation10 + $0x78] sm:$0xff] }
  0x78   :  { %v790_v47 = vpack.c.bf16 %v288_v44, %v286_v43  ;;  %v792_v48 = vpack.c.bf16 %v293_v46, %v291_v45  ;;  %v290_v49 = vld [vmem:[#allocation10 + $0x60] sm:$0xff]  ;;  %v292_v50 = vld [vmem:[#allocation10 + $0x70] sm:$0xff]  ;;  %v295_v51 = vld [vmem:[#allocation10 + $0x88] sm:$0xff] }
  0x79   :  { %727 = vmatpush3.bf16.msra.mxu0 %v724_v8  ;;  %759 = vmatpush3.bf16.msra.mxu1 %v724_v8  ;;  %v297_v52 = vld [vmem:[#allocation10 + $0x98] sm:$0xff]  ;;  %v794_v53 = vpack.c.bf16 %v292_v50, %v290_v49  ;;  %v294_v55 = vld [vmem:[#allocation10 + $0x80] sm:$0xff]  ;;  %v296_v56 = vld [vmem:[#allocation10 + $0x90] sm:$0xff] }
  0x7a   :  { %729 = vmatprep.subr.bf16.mxu0 %v728_v13  ;;  %761 = vmatprep.subr.bf16.mxu1 %v728_v13  ;;  %v796_v54 = vpack.c.bf16 %v297_v52, %v295_v51  ;;  %v299_v57 = vld [vmem:[#allocation10 + $0xa8] sm:$0xff]  ;;  %v301_v58 = vld [vmem:[#allocation10 + $0xb8] sm:$0xff]  ;;  %v798_v59 = vpack.c.bf16 %v296_v56, %v294_v55  ;;  %v298_v61 = vld [vmem:[#allocation10 + $0xa0] sm:$0xff] }
  0x7b   :  { %v800_v60 = vpack.c.bf16 %v301_v58, %v299_v57  ;;  %v300_v62 = vld [vmem:[#allocation10 + $0xb0] sm:$0xff]  ;;  %v303_v63 = vld [vmem:[#allocation10 + $0xc8] sm:$0xff]  ;;  %v305_v0 = vld [vmem:[#allocation10 + $0xd8] sm:$0xff] }
  0x7c   :  { %v802_v1 = vpack.c.bf16 %v300_v62, %v298_v61  ;;  %v804_v2 = vpack.c.bf16 %v305_v0, %v303_v63  ;;  %v302_v3 = vld [vmem:[#allocation10 + $0xc0] sm:$0xff]  ;;  %v304_v4 = vld [vmem:[#allocation10 + $0xd0] sm:$0xff]  ;;  %v307_v5 = vld [vmem:[#allocation10 + $0xe8] sm:$0xff] }
  0x7d   :  { %731 = vmatpush3.bf16.msra.mxu0 %v728_v13  ;;  %763 = vmatpush3.bf16.msra.mxu1 %v728_v13  ;;  %v309_v6 = vld [vmem:[#allocation10 + $0xf8] sm:$0xff]  ;;  %v806_v7 = vpack.c.bf16 %v304_v4, %v302_v3  ;;  %v306_v10 = vld [vmem:[#allocation10 + $0xe0] sm:$0xff]  ;;  %v308_v11 = vld [vmem:[#allocation10 + $0xf0] sm:$0xff] }
  0x7e   :  { %733 = vmatprep.subr.bf16.mxu0 %v732_v16  ;;  %765 = vmatprep.subr.bf16.mxu1 %v732_v16  ;;  %v808_v8 = vpack.c.bf16 %v309_v6, %v307_v5  ;;  %v810_v12 = vpack.c.bf16 %v308_v11, %v306_v10  ;;  %v388_v13 = vld [vmem:[#allocation8 + $0x8] sm:$0xff]  ;;  %v387_v14 = vld [vmem:[#allocation8] sm:$0xff]  ;;  %v566_v44 = vld [vmem:[#allocation11] sm:$0x3] }
  0x81   :  { %735 = vmatpush3.bf16.msra.mxu0 %v732_v16  ;;  %767 = vmatpush3.bf16.msra.mxu1 %v732_v16  ;;  %v474_v16 = vld [vmem:[#allocation7 + $0x8] sm:$0xff] }
  0x82   :  { %737 = vmatprep.subr.bf16.mxu0 %v736_v19  ;;  %769 = vmatprep.subr.bf16.mxu1 %v736_v19 }
  0x85   :  { %739 = vmatpush3.bf16.msra.mxu0 %v736_v19  ;;  %771 = vmatpush3.bf16.msra.mxu1 %v736_v19  ;;  %v473_v19 = vld [vmem:[#allocation7] sm:$0xff] }
  0x86   :  { %741 = vmatprep.subr.bf16.mxu0 %v740_v22  ;;  %773 = vmatprep.subr.bf16.mxu1 %v740_v22 }
  0x89   :  { %743 = vmatpush3.bf16.msra.mxu0 %v740_v22  ;;  %775 = vmatpush3.bf16.msra.mxu1 %v740_v22 }
  0x8a   :  { %745 = vmatprep.subr.bf16.mxu0 %v744_v25  ;;  %777 = vmatprep.subr.bf16.mxu1 %v744_v25 }
  0x8d   :  { %747 = vmatpush3.bf16.msra.mxu0 %v744_v25  ;;  %779 = vmatpush3.bf16.msra.mxu1 %v744_v25 }
  0x8e   :  { %781 = vmatprep.subr.bf16.mxu0 %v780_v29  ;;  %396 = vmatprep.subr.mxu1 %v388_v13 }
  0x90   :  { %679 = vmatmul.mubr.f32.vlgmr.msra.gmra.mrb[0].mxu0 %v1125_v28  ;;  %714 = vmatmul.mubr.f32.vlgmr.msra.gmra.mrb[0].mxu1 %v194_v34 }
  0x91   :  { %783 = vmatpush1.bf16.msra.mxu0 %v782_v35  ;;  %374 = vmatprep.mubr.f32.mxu0 %v1002_v15 }
  0x92   :  { %785 = vmatprep.subr.bf16.mxu0 %v784_v36  ;;  %397 = vmatpush1.msra.mxu1 %v387_v14 }
  0x93   :  { %460 = vmatprep.mubr.f32.mxu1 %v1002_v15  ;;  %481 = vmatprep.subr.mxu1 %v474_v16 }
  0x95   :  { %787 = vmatpush1.bf16.msra.mxu0 %v786_v41 }
  0x96   :  { %789 = vmatprep.subr.bf16.mxu0 %v788_v42  ;;  %v569_v42 = vshrl.u32 %v568_v38, 7 }
  0x98   :  { %v570_v43 = vsub.s32 0, %v569_v42  ;;  %v574_v45 = vsub.s32 1, %v569_v42 }
  0x99   :  { %791 = vmatpush1.bf16.msra.mxu0 %v790_v47 }
  0x9a   :  { %793 = vmatprep.subr.bf16.mxu0 %v792_v48  ;;  %v571_v46 = vrot.slane %v566_v44, %v570_v43  ;;  %v575_v48 = vrot.slane %v566_v44, %v574_v45 }
  0x9d   :  { %795 = vmatpush1.bf16.msra.mxu0 %v794_v53 }
  0x9e   :  { %797 = vmatprep.subr.bf16.mxu0 %v796_v54 }
  0xa1   :  { %799 = vmatpush1.bf16.msra.mxu0 %v798_v59 }
  0xa2   :  { %801 = vmatprep.subr.bf16.mxu0 %v800_v60 }
  0xa5   :  { %803 = vmatpush1.bf16.msra.mxu0 %v802_v1 }
  0xa6   :  { %805 = vmatprep.subr.bf16.mxu0 %v804_v2 }
  0xa9   :  { %807 = vmatpush1.bf16.msra.mxu0 %v806_v7 }
  0xaa   :  { %809 = vmatprep.subr.bf16.mxu0 %v808_v8 }
  0xad   :  { %811 = vmatpush1.bf16.msra.mxu0 %v810_v12 }
  0xb0   :  { %375 = vmatmul.mubr.f32.vlgmr.msra.gmra.mrb[2].mxu0 %v1120_v9 }
  0xb1   :  { %380 = vmatprep.mubr.f32.mxu0 %v1002_v15 }
  0xb4   :  { %381 = vmatmul.mubr.f32.gmra.mrb[4].mxu0 %v1125_v28 }
 0x163   :  { %v680_v17 = vpop.f32.mrb[0].mxu0  ;;  %v715_v18 = vpop.f32.mrb[0].mxu1 }
 0x164   :  { %v271_v20 = vmul.f32 %v680_v17, %v680_v17  ;;  %v184_v21 = vpop.f32.mrb[1].mxu0  ;;  %v261_v22 = vpop.f32.mrb[1].mxu1 }
 0x165   :  { %v270_v23 = vmul.f32 %v184_v21, %v184_v21  ;;  %606 = vmatmul.mubr.msk.f32.vlgmr.msra.gmra.mrb[2].mxu1 %vm389_vm0, %v184_v21 }
 0x166   :  { %v273_v24 = vsub.f32 %v715_v18, %v271_v20  ;;  %466 = vmatprep.mubr.f32.mxu1 %v1002_v15  ;;  %482 = vmatpush1.msra.mxu1 %v473_v19 }
 0x167   :  { %v272_v25 = vsub.f32 %v261_v22, %v270_v23 }
 0x168   :  { %v275_v26 = vadd.f32 1e-05, %v273_v24 }
 0x169   :  { %v274_v9 = vadd.f32 1e-05, %v272_v25  ;;  %607 = vmatmul.mubr.msk.f32.gmra.mrb[4].mxu1 %vm389_vm0, %v680_v17 }
 0x16a   :  { %545 = vmatprep.mubr.f32.mxu1 %v1002_v15 }
 0x16b   :  { %824 = vrsqrt.f32 %v274_v9 }
 0x16c   :  { %826 = vrsqrt.f32 %v275_v26 }
 0x175   :  { %v825_v27 = vpop.eup %824 }
 0x176   :  { %608 = vmatmul.mubr.msk.f32.vlgmr.msra.gmra.mrb[6].mxu1 %vm389_vm0, %v825_v27  ;;  %v827_v28 = vpop.eup %826 }
 0x177   :  { %551 = vmatprep.mubr.f32.mxu1 %v1002_v15 }
 0x17a   :  { %609 = vmatmul.mubr.msk.f32.gmra.mrb[8].mxu1 %vm389_vm0, %v827_v28 }
 0x183   :  { %v376_v29 = vpop.f32.mrb[2].mxu0 }
 0x184   :  { %v378_v30 = vpop.f32.mrb[3].mxu0 }
 0x187   :  { %v382_v31 = vpop.f32.mrb[4].mxu0 }
 0x188   :  { %v384_v32 = vpop.f32.mrb[5].mxu0 }
 0x238   :  { %v462_v33 = vpop.f32.mrb[2].mxu1 }
 0x239   :  { %v558_v34 = vsub.f32 %v376_v29, %v462_v33  ;;  %v464_v35 = vpop.f32.mrb[3].mxu1 }
 0x23a   :  { %v559_v36 = vsub.f32 %v378_v30, %v464_v35 }
 0x23c   :  { %v468_v37 = vpop.f32.mrb[4].mxu1 }
 0x23d   :  { %v560_v39 = vsub.f32 %v382_v31, %v468_v37  ;;  %v470_v40 = vpop.f32.mrb[5].mxu1 }
 0x23e   :  { %v561_v41 = vsub.f32 %v384_v32, %v470_v40 }
 0x249   :  { %v547_v47 = vpop.f32.mrb[6].mxu1 }
 0x24a   :  { %v562_v49 = vmul.f32 %v558_v34, %v547_v47  ;;  %v549_v50 = vpop.f32.mrb[7].mxu1 }
 0x24b   :  { %v563_v51 = vmul.f32 %v559_v36, %v549_v50 }
 0x24c   :  { %v578_v52 = vadd.f32 %v571_v46, %v562_v49 }
 0x24d   :  { %v579_v53 = vadd.f32 %v575_v48, %v563_v51  ;;  %v553_v54 = vpop.f32.mrb[8].mxu1 }
 0x24e   :  { %582 = vst [vmem:[#allocation13] sm:$0xff] %v578_v52  ;;  %v564_v55 = vmul.f32 %v560_v39, %v553_v54  ;;  %v555_v56 = vpop.f32.mrb[9].mxu1 }
 0x24f   :  { %583 = vst [vmem:[#allocation13 + $0x8] sm:$0xff] %v579_v53  ;;  %v565_v57 = vmul.f32 %v561_v41, %v555_v56 }
 0x250   :  { %v580_v58 = vadd.f32 %v571_v46, %v564_v55 }
 0x251   :  { %v581_v59 = vadd.f32 %v575_v48, %v565_v57 }
 0x252   :  { %584 = vst [vmem:[#allocation13 + $0x10] sm:$0xff] %v580_v58 }
 0x253   :  { %585 = vst [vmem:[#allocation13 + $0x18] sm:$0xff] %v581_v59 }
 0x254   :  { %971 = shalt.err (!%p968_p10)
}
 0x255   :  { %s972_s1 = scalar_lea.hbm %s1157_s6, 512 }
 0x256   :  { %p973_p11 = scmp.ne.s32.totalorder %s1157_s6, %s972_s1  ;;  %p976_p12 = scmp.lt.u32.totalorder %s972_s1, %s1157_s6 }
 0x258   :  { %p978_p13 = pnand %p976_p12, %p973_p11 }
 0x25a   :  { %981 = shalt.err (!%p978_p13)
}
 0x25b   :  { %597 = dma.vmem_to_hbm [thread:$0]  %s592_s20, 512, %s1157_s6, [#allocation4], %s999_s2, %s999_s2, %s1000_s26  }
 0x25c   :  { %990 = dma.done.wait [#allocation4], 512  }
 0x25d   :  { %991 = vsyncadd [#allocation4], 4294966784 }
 0x25e   :  { %601 = vsyncpa [#allocation3], 1 }
 0x25f   :  { %602 = vsyncpa [#allocation6], 1 }
 0x260   :  { %603 = vsyncpa [#allocation9], 1 }
 0x261   :  { %604 = vsyncpa [#allocation12], 1 }
 0x262   :  { %605 = vsyncpa [#allocation4], 1 }

</bundles_post_ra>
